<compile_context>
chip_gen: v5e
topology: v5e:2x2
jax: 0.10.0
libtpu: 0.0.40
codegen_flags: <defaults>
</compile_context>

<pallas_src>
import math

import jax
import jax.numpy as jnp
from jax.experimental import pallas as pl
from jax.experimental.pallas import tpu as pltpu


_DEFAULT_TILE = 2048  # pixels per tile (lane axis); capped by H*W and VMEM budget


def _choose_tile(hw, c_in, c_out, itemsize, desired=_DEFAULT_TILE):
    """Largest lane-dense pixel tile that fits a conservative VMEM budget."""
    # Conservative buffer budget that is safe on v5e/v6e (128 MiB) and v7x (64 MiB),
    # accounting for double-buffered input and output pixel tiles.
    budget = 12 * 1024 * 1024
    per_pixel = 2 * itemsize * (c_in + c_out)  # x2 for double buffering
    cap = max(128, (budget // per_pixel) // 128 * 128)
    desired = min(desired, cap)
    if hw <= 128:
        return hw                      # full-dim block (always legal)
    if hw % 128 == 0:
        return min(desired, hw)
    # hw not a multiple of 128: use a 128-multiple tile, last block is masked.
    return min(desired, (hw // 128) * 128)


def _make_kernel(c_in, c_out, use_vpu):
    def kernel(x_ref, w_ref, b_ref, o_ref):
        # x_ref: (1, C_in, T)  w_ref: (C_out, C_in)  b_ref: (C_out, 1)
        # o_ref: (1, C_out, T)
        x = x_ref[0].astype(jnp.float32)        # (C_in, T)   pixels lane-dense
        w = w_ref[...].astype(jnp.float32)      # (C_out, C_in)
        b = b_ref[...].astype(jnp.float32)      # (C_out, 1)

        if use_vpu:
            # Tiny contraction: VPU broadcast-FMA over channels (skip the MXU).
            #   acc[co, p] = sum_ci w[co, ci] * x[ci, p]
            acc = w[:, 0:1] * x[0:1, :]
            for ci in range(1, c_in):
                acc = acc + w[:, ci : ci + 1] * x[ci : ci + 1, :]
        else:
            # Large channel counts: use the MXU.
            acc = jnp.dot(w, x, preferred_element_type=jnp.float32)

        o_ref[0] = (acc + b).astype(o_ref.dtype)

    return kernel


def pixel_linear_regression(x_nchw, weight, bias, *, tile_hw=None):
    """1x1 conv forward (matches PyTorch nn.Conv2d(in, out, 1)).

    x_nchw : (N, C_in, H, W)
    weight : (C_out, C_in, 1, 1)   -- PyTorch Conv2d weight layout
    bias   : (C_out,)
    returns: (N, C_out, H, W)
    """
    N, C_in, H, W = x_nchw.shape
    C_out = weight.shape[0]
    HW = H * W

    # Free reshapes only (no data movement): NCHW -> (N, C_in, H*W).
    x_flat = x_nchw.reshape(N, C_in, HW)
    w_mat = weight.reshape(C_out, C_in)
    b_col = bias.reshape(C_out, 1)

    itemsize = jnp.dtype(x_nchw.dtype).itemsize
    tile = tile_hw if tile_hw is not None else _choose_tile(HW, C_in, C_out, itemsize)
    num_tiles = pl.cdiv(HW, tile)

    use_vpu = C_in <= 32  # tiny contraction -> VPU FMAs; otherwise MXU

    flops = 2 * N * HW * C_in * C_out
    bytes_accessed = (
        x_flat.size * itemsize
        + N * C_out * HW * itemsize
        + w_mat.size * jnp.dtype(w_mat.dtype).itemsize
        + b_col.size * jnp.dtype(b_col.dtype).itemsize
    )

    out_flat = pl.pallas_call(
        _make_kernel(C_in, C_out, use_vpu),
        out_shape=jax.ShapeDtypeStruct((N, C_out, HW), x_nchw.dtype),
        grid_spec=pltpu.PrefetchScalarGridSpec(
            num_scalar_prefetch=0,
            grid=(N, num_tiles),
            in_specs=[
                pl.BlockSpec((1, C_in, tile), lambda n, t: (n, 0, t)),
                pl.BlockSpec((C_out, C_in), lambda n, t: (0, 0)),
                pl.BlockSpec((C_out, 1), lambda n, t: (0, 0)),
            ],
            out_specs=pl.BlockSpec((1, C_out, tile), lambda n, t: (n, 0, t)),
        ),
        compiler_params=pltpu.CompilerParams(
            dimension_semantics=("parallel", "parallel"),
            vmem_limit_bytes=32 * 1024 * 1024,
        ),
        cost_estimate=pl.CostEstimate(
            flops=flops, transcendentals=0, bytes_accessed=bytes_accessed
        ),
    )(x_flat, w_mat, b_col)

    # Free reshape back: (N, C_out, H*W) -> (N, C_out, H, W).
    return out_flat.reshape(N, C_out, H, W)


def _init_conv1x1_params(key, in_channels, out_channels, dtype=jnp.float32):
    """Deterministic init matching nn.Conv2d default (kaiming-uniform style)."""
    kw, kb = jax.random.split(key)
    fan_in = in_channels * 1 * 1
    bound_w = math.sqrt(1.0 / fan_in) * math.sqrt(3.0)  # kaiming_uniform(a=sqrt(5))
    weight = jax.random.uniform(
        kw, (out_channels, in_channels, 1, 1), dtype, -bound_w, bound_w
    )
    bound_b = 1.0 / math.sqrt(fan_in)
    bias = jax.random.uniform(kb, (out_channels,), dtype, -bound_b, bound_b)
    return weight, bias


if __name__ == "__main__":
    key = jax.random.PRNGKey(0)
    k_x, k_p = jax.random.split(key)

    N, C_in, H, W = 2, 4, 16, 16
    C_out = 8

    x = jax.random.normal(k_x, (N, C_in, H, W), jnp.float32)
    weight, bias = _init_conv1x1_params(k_p, C_in, C_out)

    y = pixel_linear_regression(x, weight, bias)
    y = jax.block_until_ready(y)

    # Reference check in plain JAX (einsum 1x1 conv).
    y_ref = jnp.einsum("nchw,oc->nohw", x, weight.reshape(C_out, C_in)) + bias[
        None, :, None, None
    ]
    assert y.shape == (N, C_out, H, W)
    assert jnp.allclose(y, y_ref, atol=1e-5, rtol=1e-5)

    print("KERNEL_OK")
</pallas_src>

<mosaic_0001>
module attributes {stable_mosaic.version = 11 : i64} {
  func.func @kernel(%arg0: i32, %arg1: i32, %arg2: memref<1x4x256xf32, #tpu.memory_space<vmem>>, %arg3: memref<8x4xf32, #tpu.memory_space<vmem>>, %arg4: memref<8x1xf32, #tpu.memory_space<vmem>>, %arg5: memref<1x8x256xf32, #tpu.memory_space<vmem>>) attributes {dimension_semantics = [#tpu.dimension_semantics<parallel>, #tpu.dimension_semantics<parallel>], iteration_bounds = array<i64: 2, 1>, scalar_prefetch = 0 : i64, scratch_operands = 0 : i64, tpu.core_type = #tpu.core_type<tc>, window_params = [{transform_indices = @transform_0, window_bounds = array<i64: 1, 4, 256>}, {pipeline_mode = #tpu.pipeline_mode<synchronous>, transform_indices = @transform_1, window_bounds = array<i64: 8, 4>}, {pipeline_mode = #tpu.pipeline_mode<synchronous>, transform_indices = @transform_2, window_bounds = array<i64: 8, 1>}, {transform_indices = @transform_3, window_bounds = array<i64: 1, 8, 256>}]} {
    %c0 = arith.constant 0 : index
    %c0_0 = arith.constant 0 : index
    %c0_1 = arith.constant 0 : index
    %0 = vector.load %arg2[%c0, %c0_0, %c0_1] : memref<1x4x256xf32, #tpu.memory_space<vmem>>, vector<1x4x256xf32>
    %1 = vector.shape_cast %0 : vector<1x4x256xf32> to vector<4x256xf32>
    %c0_2 = arith.constant 0 : index
    %c0_3 = arith.constant 0 : index
    %2 = vector.load %arg3[%c0_2, %c0_3] : memref<8x4xf32, #tpu.memory_space<vmem>>, vector<8x4xf32>
    %c0_4 = arith.constant 0 : index
    %c0_5 = arith.constant 0 : index
    %3 = vector.load %arg4[%c0_4, %c0_5] : memref<8x1xf32, #tpu.memory_space<vmem>>, vector<8x1xf32>
    %4 = vector.extract_strided_slice %2 {offsets = [0, 0], sizes = [8, 1], strides = [1, 1]} : vector<8x4xf32> to vector<8x1xf32>
    %5 = vector.extract_strided_slice %1 {offsets = [0, 0], sizes = [1, 256], strides = [1, 1]} : vector<4x256xf32> to vector<1x256xf32>
    %6 = vector.broadcast %4 : vector<8x1xf32> to vector<8x256xf32>
    %7 = vector.broadcast %5 : vector<1x256xf32> to vector<8x256xf32>
    %8 = arith.mulf %6, %7 : vector<8x256xf32>
    %9 = vector.extract_strided_slice %2 {offsets = [0, 1], sizes = [8, 1], strides = [1, 1]} : vector<8x4xf32> to vector<8x1xf32>
    %10 = vector.extract_strided_slice %1 {offsets = [1, 0], sizes = [1, 256], strides = [1, 1]} : vector<4x256xf32> to vector<1x256xf32>
    %11 = vector.broadcast %9 : vector<8x1xf32> to vector<8x256xf32>
    %12 = vector.broadcast %10 : vector<1x256xf32> to vector<8x256xf32>
    %13 = arith.mulf %11, %12 : vector<8x256xf32>
    %14 = arith.addf %8, %13 : vector<8x256xf32>
    %15 = vector.extract_strided_slice %2 {offsets = [0, 2], sizes = [8, 1], strides = [1, 1]} : vector<8x4xf32> to vector<8x1xf32>
    %16 = vector.extract_strided_slice %1 {offsets = [2, 0], sizes = [1, 256], strides = [1, 1]} : vector<4x256xf32> to vector<1x256xf32>
    %17 = vector.broadcast %15 : vector<8x1xf32> to vector<8x256xf32>
    %18 = vector.broadcast %16 : vector<1x256xf32> to vector<8x256xf32>
    %19 = arith.mulf %17, %18 : vector<8x256xf32>
    %20 = arith.addf %14, %19 : vector<8x256xf32>
    %21 = vector.extract_strided_slice %2 {offsets = [0, 3], sizes = [8, 1], strides = [1, 1]} : vector<8x4xf32> to vector<8x1xf32>
    %22 = vector.extract_strided_slice %1 {offsets = [3, 0], sizes = [1, 256], strides = [1, 1]} : vector<4x256xf32> to vector<1x256xf32>
    %23 = vector.broadcast %21 : vector<8x1xf32> to vector<8x256xf32>
    %24 = vector.broadcast %22 : vector<1x256xf32> to vector<8x256xf32>
    %25 = arith.mulf %23, %24 : vector<8x256xf32>
    %26 = arith.addf %20, %25 : vector<8x256xf32>
    %27 = vector.broadcast %3 : vector<8x1xf32> to vector<8x256xf32>
    %28 = arith.addf %26, %27 : vector<8x256xf32>
    %c0_6 = arith.constant 0 : index
    %c0_7 = arith.constant 0 : index
    %c0_8 = arith.constant 0 : index
    %29 = vector.load %arg5[%c0_6, %c0_7, %c0_8] : memref<1x8x256xf32, #tpu.memory_space<vmem>>, vector<1x8x256xf32>
    %30 = vector.shape_cast %29 : vector<1x8x256xf32> to vector<8x256xf32>
    %31 = vector.shape_cast %28 : vector<8x256xf32> to vector<1x8x256xf32>
    tpu.vector_store %arg5[%c0_6, %c0_7, %c0_8], %31 {strides = array<i32>} : memref<1x8x256xf32, #tpu.memory_space<vmem>>, vector<1x8x256xf32>,
    return
  }
  func.func @transform_0(%arg0: i32, %arg1: i32) -> (i32, i32, i32) {
    %c0_i32 = arith.constant 0 : i32
    %c0_i32_0 = arith.constant 0 : i32
    return %arg0, %c0_i32, %arg1 : i32, i32, i32
  }
  func.func @transform_1(%arg0: i32, %arg1: i32) -> (i32, i32) {
    %c0_i32 = arith.constant 0 : i32
    %c0_i32_0 = arith.constant 0 : i32
    %c0_i32_1 = arith.constant 0 : i32
    return %c0_i32, %c0_i32_0 : i32, i32
  }
  func.func @transform_2(%arg0: i32, %arg1: i32) -> (i32, i32) {
    %c0_i32 = arith.constant 0 : i32
    %c0_i32_0 = arith.constant 0 : i32
    %c0_i32_1 = arith.constant 0 : i32
    return %c0_i32, %c0_i32_0 : i32, i32
  }
  func.func @transform_3(%arg0: i32, %arg1: i32) -> (i32, i32, i32) {
    %c0_i32 = arith.constant 0 : i32
    %c0_i32_0 = arith.constant 0 : i32
    return %arg0, %c0_i32, %arg1 : i32, i32, i32
  }
}

</mosaic_0001>

<bundles_post_ra>
// kernel: tpu_custom_call.1
= control target key start
LH: loop header
LB: loop body
LE: loop exit
PB: predicated region body
PF: predicated region fallthrough
CT: control target
= control target key end

     0   :  { %8 = vsyncpa [#allocation3], 0  ;;  %s654_s0 = inlined_call_operand.vmem [shape: f32[2,4,256], index: 0, kind: input, shape index: {}]   ;;  %s655_s1 = inlined_call_operand.vmem [shape: f32[8,4], index: 1, kind: input, shape index: {}]   ;;  %s656_s2 = inlined_call_operand.vmem [shape: f32[8,1], index: 2, kind: input, shape index: {}]   ;;  %s657_s3 = inlined_call_operand.hbm [shape: f32[2,8,256], index: 3, kind: output, shape index: {}]  }
   0x1   :  { %10 = vsyncpa [#allocation3 + $0x1], 0  ;;  %s547_s12 = smov 0   ;;  %s549_s13 = smov 0  }
   0x2   :  { %s551_s14 = smov 0   ;;  %s553_s15 = smov 0  }
   0x3   :  { %s555_s16 = smov 0   ;;  %s557_s17 = smov 0  }
   0x4 LB: > { %s363_s18 = sadd.s32 4294967295, %s521_s17   ;;  %s364_s19 = sadd.s32 4294967294, %s521_s17   ;;  %s521_s17 = sphi %s557_s17, %s16_s17   ;;  %s517_s16 = sphi %s555_s16, %s664_s16   ;;  %s513_s15 = sphi %s553_s15, %s663_s15   ;;  %s509_s14 = sphi %s551_s14, %s662_s14   ;;  %s505_s13 = sphi %s549_s13, %s661_s13   ;;  %s501_s12 = sphi %s547_s12, %s660_s12  }
   0x5   : > { %s28_s20 = sadd.s32 1, %s517_s16  ;;  %s107_s21 = sadd.s32 1, %s509_s14 }
   0x6   : > { %p30_p0 = scmp.ge.s32.totalorder %s28_s20, 2  ;;  %p117_p1 = scmp.ne.s32.totalorder %s509_s14, %s505_s13 }
   0x7   : > { %p118_p2 = scmp.eq.s32.totalorder %s363_s18, 1  ;;  %p123_p3 = scmp.ne.s32.totalorder %s505_s13, %s501_s12 }
   0x8   : > { %s666_s20 = smov (%p30_p0, %s28_s20), 0  ;;  %p124_p5 = scmp.eq.s32.totalorder %s364_s19, 1 }
   0x9   : > { %p587_p4 = por %p118_p2, %p117_p1  ;;  %s102_s23 = ssub.s32 %s517_s16, %s666_s20 }
   0xa   : > { %p367_p6 = scmp.ge.s32.totalorder %s521_s17, 1  ;;  %p105_p7 = scmp.eq.s32.totalorder %s102_s23, 0 }
   0xb   : > { %p594_p8 = por %p124_p5, %p123_p3  ;;  %p161_p9 = scmp.lt.s32.totalorder %s521_s17, 3 }
   0xc   : > { %s600_s25 = scalar_select %p105_p7, %s509_s14, %s107_s21  }
   0xd   : > { %p162_p10 = pnand %p367_p6, %p161_p9 }
   0xe   : > { %p190_p11 = scmp.lt.s32.totalorder (!%p162_p10), %s513_s15, 1  ;;  %s186_s8 = sand.u32 (!%p162_p10), 1, %s505_s13  }
   0xf   : > { %165 = sbr.rel (%p162_p10) target bundleno = 160 (0xa0), region = 32  ;;  %s368_s9 = sshll.u32 (!%p162_p10), %s186_s8, 4 }
  0x10   : > { %s377_s10 = sshll.u32 (!%p162_p10), %s513_s15, 4  ;;  %s188_s21 = scalar_lea.vmem (!%p162_p10), [#allocation2], %s368_s9 }
  0x11   : > { %s282_s19 = scalar_lea.hbm (!%p162_p10), %s657_s3, %s377_s10  ;;  %s284_s23 = sshll.u32 (!%p162_p10), %s188_s21, 4  ;;  %s285_s23 = int_to_ptr.vmem [resolvable:$true] %s284_s23 }
  0x12   : > { %s269_s26 = scalar_lea.sflag (!%p162_p10), [#allocation3], %s186_s8 }
  0x14   : > { %v201_v0 = vld [vmem:[%s655_s1] sm:$0xff]  ;;  %v523_v1 = vmov 0   ;;  %v524_v2 = vmov 2   ;;  %v525_v4 = vmov 1   ;;  %v526_v5 = vmov 3   ;;  %s191_s30 = scalar_select %p190_p11, %s513_s15, 1 }
  0x15   : > { %437 = vset.pattern.permute.xlu0 %v523_v1  ;;  %439 = vset.pattern.permute.xlu1 %v524_v2  ;;  %v202_v3 = vld [vmem:[%s656_s2] sm:$0xff]  ;;  %s286_s15 = sshll.u32 %s282_s19, 4  ;;  %s287_s15 = int_to_ptr.hbm [resolvable:$true] %s286_s15 }
  0x16   : > { %205 = vperm.xlu0 %437, %v201_v0   ;;  %232 = vperm.xlu1 %439, %v201_v0   ;;  %s376_s4 = sshll.u32 %s191_s30, 3  ;;  %s457_s27 = sshra.s32 %s287_s15, 4  ;;  %s458_s27 = int_to_ptr.hbm [resolvable:$true] %s457_s27 }
  0x17   : > { %441 = vset.pattern.permute.xlu2 %v523_v1  ;;  %s197_s7 = scalar_lea.vmem %s654_s0, %s376_s4  ;;  %s459_s28 = scalar_lea.hbm %s458_s27, 16 }
  0x18   : > { %261 = vperm.xlu2 %441, %v202_v3   ;;  %v200_v6 = vld [vmem:[%s197_s7] sm:$0xff]  ;;  %p460_p12 = scmp.ne.s32.totalorder %s458_s27, %s459_s28  ;;  %s463_s4 = scalar_lea.hbm %s657_s3, 32 }
  0x19   : > { %v209_v9 = vperm.slane %v200_v6, 0  ;;  %v210_v10 = vperm.slane %v200_v6, 4  ;;  %v221_v11 = vperm.slane %v200_v6, 1  ;;  %v222_v12 = vperm.slane %v200_v6, 5  ;;  %p464_p1 = scmp.lt.s32.totalorder %s458_s27, %s657_s3  ;;  %p465_p2 = scmp.lt.s32.totalorder %s463_s4, %s459_s28 }
  0x1a   : > { %v235_v13 = vperm.slane %v200_v6, 2  ;;  %v236_v14 = vperm.slane %v200_v6, 6  ;;  %v249_v15 = vperm.slane %v200_v6, 3  ;;  %v250_v16 = vperm.slane %v200_v6, 7  ;;  %p461_p13 = pnand %p460_p12, %p587_p4 }
  0x1b   : > { %v213_v17 = vperm.slane %v209_v9, 0  ;;  %v214_v18 = vperm.slane %v210_v10, 0  ;;  %v225_v19 = vperm.slane %v221_v11, 1  ;;  %v226_v20 = vperm.slane %v222_v12, 1  ;;  %p466_p3 = por %p465_p2, %p464_p1 }
  0x1c   : > { %v239_v21 = vperm.slane %v235_v13, 2  ;;  %v240_v22 = vperm.slane %v236_v14, 2  ;;  %v253_v23 = vperm.slane %v249_v15, 3  ;;  %v254_v24 = vperm.slane %v250_v16, 3  ;;  %p462_p0 = pneg %p461_p13 }
  0x1e   : > { %438 = vset.pattern.permute.xlu0 %v525_v4  ;;  %440 = vset.pattern.permute.xlu1 %v526_v5  ;;  %p467_p5 = pnand %p466_p3, %p462_p0 }
  0x1f   : > { %218 = vperm.xlu0 %438, %v201_v0   ;;  %246 = vperm.xlu1 %440, %v201_v0  }
  0x27   : > { %442 = vset.pattern.permute.xlu0 %v523_v1 }
  0x72   : > { %v262_v39 = vpop.permute.xlu2 %261 }
  0x88   : > { %v206_v7 = vpop.permute.xlu0 %205  ;;  %v233_v8 = vpop.permute.xlu1 %232 }
  0x89   : > { %v215_v27 = vmul.f32 %v213_v17, %v206_v7  ;;  %v216_v28 = vmul.f32 %v214_v18, %v206_v7  ;;  %v241_v31 = vmul.f32 %v239_v21, %v233_v8  ;;  %v242_v32 = vmul.f32 %v240_v22, %v233_v8 }
  0x91   : > { %v219_v25 = vpop.permute.xlu0 %218  ;;  %v247_v26 = vpop.permute.xlu1 %246 }
  0x92   : > { %v227_v29 = vmul.f32 %v225_v19, %v219_v25  ;;  %v228_v30 = vmul.f32 %v226_v20, %v219_v25  ;;  %v255_v35 = vmul.f32 %v253_v23, %v247_v26  ;;  %v256_v36 = vmul.f32 %v254_v24, %v247_v26 }
  0x94   : > { %v229_v33 = vadd.f32 %v227_v29, %v215_v27  ;;  %v230_v34 = vadd.f32 %v228_v30, %v216_v28 }
  0x96   : > { %v243_v37 = vadd.f32 %v241_v31, %v229_v33  ;;  %v244_v38 = vadd.f32 %v242_v32, %v230_v34 }
  0x98   : > { %v257_v40 = vadd.f32 %v255_v35, %v243_v37  ;;  %v258_v41 = vadd.f32 %v256_v36, %v244_v38 }
  0x9a   : > { %v264_v42 = vadd.f32 %v262_v39, %v257_v40  ;;  %v265_v43 = vadd.f32 %v262_v39, %v258_v41 }
  0x9c   : > { %266 = vst [vmem:[%s188_s21] sm:$0xff] %v264_v42 }
  0x9d   : > { %267 = vst [vmem:[%s188_s21 + $0x8] sm:$0xff] %v265_v43 }
  0x9e   : > { %470 = shalt.err (!%p467_p5)
}
  0x9f   : > { %378 = dma.vmem_to_hbm [thread:$0]  (%p587_p4), %s285_s23, 256, %s287_s15, %s269_s26  }
  0xa0 PF: > { %p384_p6 = scmp.ge.s32.totalorder %s521_s17, 2  ;;  %s298_s7 = sand.u32 1, %s501_s12  }
  0xa1   : > { %s299_s8 = scalar_lea.sflag [#allocation3], %s298_s7 }
  0xa2   : > { %p381_p7 = pnand %p384_p6, %p594_p8 }
  0xa4   : > { %p382_p9 = pneg %p381_p7 }
  0xa6   : > { %496 = dma.done.wait (%p382_p9), %s299_s8, 256  }
  0xa7   : > { %498 = vsyncadd (%p382_p9), %s299_s8, 4294967040  ;;  %s16_s17 = sadd.s32 1, %s521_s17   ;;  %s660_s12 = smov %s505_s13 }
  0xa8   : > { %p13_p10 = scmp.ge.s32.totalorder %s16_s17, 4   ;;  %s661_s13 = smov %s509_s14 }
  0xa9   : > { %s662_s14 = smov %s600_s25  ;;  %s663_s15 = smov %s517_s16 }
  0xaa   : > { %s664_s16 = smov %s666_s20  ;;  %15 = sbr.rel (!%p13_p10) target bundleno = 4 (0x4), region = 67 }
  0xaf   :  { %305 = vsyncpa [#allocation3], 1 }
  0xb0   :  { %307 = vsyncpa [#allocation3 + $0x1], 1 }

</bundles_post_ra>
